<compile_context>
chip_gen: v5e
topology: v5e:2x2
jax: 0.10.0
libtpu: 0.0.40
codegen_flags: <defaults>
</compile_context>

<pallas_src>
from functools import partial

import jax
import jax.numpy as jnp
from jax.experimental import pallas as pl
from jax.experimental.pallas import tpu as pltpu


HIDDEN = 200        # logical hidden width (matches the PyTorch module)
HIDDEN_PAD = 256    # lane/MXU-aligned padded hidden width
LANE = 128


def _round_up(n, m):
    return ((n + m - 1) // m) * m


def _cdiv(a, b):
    return -(-a // b)


def _mlp_kernel(x_ref, w123_ref, w4_ref, b_ref, o_ref):
    obs_pad = x_ref.shape[1]
    out_pad = o_ref.shape[1]

    # Static, tile-aligned slices of the packed blobs (row offsets are
    # multiples of 128, lane offsets multiples of 128 -> no relayout).
    w1 = w123_ref[0:obs_pad, :]
    w2 = w123_ref[obs_pad:obs_pad + HIDDEN_PAD, :]
    w3 = w123_ref[obs_pad + HIDDEN_PAD:obs_pad + 2 * HIDDEN_PAD, :]
    b1 = b_ref[:, 0:HIDDEN_PAD]
    b2 = b_ref[:, HIDDEN_PAD:2 * HIDDEN_PAD]
    b3 = b_ref[:, 2 * HIDDEN_PAD:3 * HIDDEN_PAD]
    b4 = b_ref[:, 3 * HIDDEN_PAD:3 * HIDDEN_PAD + out_pad]

    # bf16 operands on the MXU, f32 accumulation; bias-add / ReLU in f32.
    x = x_ref[...]
    h = jnp.dot(x, w1, preferred_element_type=jnp.float32) + b1
    h = jnp.maximum(h, 0.0).astype(jnp.bfloat16)

    h = jnp.dot(h, w2, preferred_element_type=jnp.float32) + b2
    h = jnp.maximum(h, 0.0).astype(jnp.bfloat16)

    h = jnp.dot(h, w3, preferred_element_type=jnp.float32) + b3
    h = jnp.maximum(h, 0.0).astype(jnp.bfloat16)

    out = jnp.dot(h, w4_ref[...], preferred_element_type=jnp.float32) + b4
    o_ref[...] = out.astype(o_ref.dtype)


def prepare_params(params):
    """Pad to lane-dense shapes and pack into 3 operands (done ONCE).

    Returns:
      w123: (obs_pad + 2*256, 256) bf16  -- w1 | w2 | w3 stacked on rows
      w4:   (256, out_pad) bf16
      b:    (1, 3*256 + out_pad) f32     -- b1 | b2 | b3 | b4 on lanes
    Zero-padding keeps the forward pass mathematically identical.
    """
    obs_dim = params["w1"].shape[0]
    act_dim = params["w4"].shape[1]
    obs_pad = _round_up(obs_dim, LANE)
    out_pad = _round_up(act_dim, LANE)

    w1 = jnp.pad(params["w1"], ((0, obs_pad - obs_dim), (0, HIDDEN_PAD - HIDDEN)))
    w2 = jnp.pad(params["w2"], ((0, HIDDEN_PAD - HIDDEN), (0, HIDDEN_PAD - HIDDEN)))
    w3 = jnp.pad(params["w3"], ((0, HIDDEN_PAD - HIDDEN), (0, HIDDEN_PAD - HIDDEN)))
    w4 = jnp.pad(params["w4"], ((0, HIDDEN_PAD - HIDDEN), (0, out_pad - act_dim)))

    b1 = jnp.pad(params["b1"], ((0, 0), (0, HIDDEN_PAD - HIDDEN)))
    b2 = jnp.pad(params["b2"], ((0, 0), (0, HIDDEN_PAD - HIDDEN)))
    b3 = jnp.pad(params["b3"], ((0, 0), (0, HIDDEN_PAD - HIDDEN)))
    b4 = jnp.pad(params["b4"], ((0, 0), (0, out_pad - act_dim)))

    return {
        "w123": jnp.concatenate([w1, w2, w3], axis=0).astype(jnp.bfloat16),
        "w4": w4.astype(jnp.bfloat16),
        "b": jnp.concatenate([b1, b2, b3, b4], axis=1).astype(jnp.float32),
        "act_dim": act_dim,
    }


@partial(jax.jit, static_argnames=("act_dim", "block_m"))
def _forward_impl(x, w123, w4, b, *, act_dim, block_m):
    batch, obs_dim = x.shape
    obs_pad = w123.shape[0] - 2 * HIDDEN_PAD
    out_pad = w4.shape[1]

    # Pick the batch block to minimize padding (grid of near-equal blocks,
    # rows rounded to 16 so bf16 sublane-packed rows stay full).
    grid = _cdiv(batch, block_m)
    bm = _round_up(_cdiv(batch, grid), 16)
    padded_batch = bm * grid

    xb = x.astype(jnp.bfloat16)
    xb = jnp.pad(xb, ((0, padded_batch - batch), (0, obs_pad - obs_dim)))

    out = pl.pallas_call(
        _mlp_kernel,
        out_shape=jax.ShapeDtypeStruct((padded_batch, out_pad), jnp.float32),
        grid=(grid,),
        in_specs=[
            pl.BlockSpec((bm, obs_pad), lambda i: (i, 0)),
            pl.BlockSpec(w123.shape, lambda i: (0, 0)),   # constant -> fetched once
            pl.BlockSpec(w4.shape, lambda i: (0, 0)),
            pl.BlockSpec(b.shape, lambda i: (0, 0)),
        ],
        out_specs=pl.BlockSpec((bm, out_pad), lambda i: (i, 0)),
        compiler_params=pltpu.CompilerParams(
            dimension_semantics=("parallel",)),
    )(xb, w123, w4, b)

    return out[:batch, :act_dim]


def categorical_mlp_forward(x, prepared, *, block_m=512):
    """CategoricalMLP logits via a Pallas kernel.

    x:        [batch, obs_dim] float32
    prepared: output of prepare_params (packed, padded bf16 weights / f32 biases)
    """
    # TODO(synk): StochasticPolicy.forward(x) is assumed to be an identity
    # passthrough of the observation (its definition is not in the snippet).
    return _forward_impl(x, prepared["w123"], prepared["w4"], prepared["b"],
                         act_dim=prepared["act_dim"], block_m=block_m)


def init_params(key, obs_dim, act_dim):
    """Deterministic PyTorch-style Linear init: U(-1/sqrt(fan_in), 1/sqrt(fan_in))."""
    dims = [(obs_dim, HIDDEN), (HIDDEN, HIDDEN), (HIDDEN, HIDDEN), (HIDDEN, act_dim)]
    params = {}
    keys = jax.random.split(key, 2 * len(dims))
    for i, (fan_in, fan_out) in enumerate(dims):
        bound = 1.0 / jnp.sqrt(jnp.float32(fan_in))
        w = jax.random.uniform(keys[2 * i], (fan_in, fan_out),
                               minval=-bound, maxval=bound, dtype=jnp.float32)
        b = jax.random.uniform(keys[2 * i + 1], (1, fan_out),
                               minval=-bound, maxval=bound, dtype=jnp.float32)
        params[f"w{i + 1}"] = w
        params[f"b{i + 1}"] = b
    return params


def reference_forward(x, params):
    h = jnp.maximum(x @ params["w1"] + params["b1"], 0.0)
    h = jnp.maximum(h @ params["w2"] + params["b2"], 0.0)
    h = jnp.maximum(h @ params["w3"] + params["b3"], 0.0)
    return h @ params["w4"] + params["b4"]


if __name__ == "__main__":
    key = jax.random.PRNGKey(0)
    k_x, k_p, k_x2 = jax.random.split(key, 3)

    batch = 2
    obs_dim = 16   # obs_shape
    act_dim = 4    # act_shape

    x = jax.random.normal(k_x, (batch, obs_dim), dtype=jnp.float32)
    params = init_params(k_p, obs_dim, act_dim)
    prepared = prepare_params(params)

    logits = jax.block_until_ready(categorical_mlp_forward(x, prepared))
    ref = reference_forward(x, params)
    assert logits.shape == (batch, act_dim)
    # bf16 weights on the MXU (f32 accumulate) -> loosened tolerance vs f32 ref.
    assert jnp.allclose(logits, ref, atol=2e-2, rtol=2e-2), "mismatch vs reference"

    # Second check: awkward batch size (single 304-row block, no 2x waste).
    x2 = jax.random.normal(k_x2, (300, obs_dim), dtype=jnp.float32)
    logits2 = jax.block_until_ready(categorical_mlp_forward(x2, prepared))
    ref2 = reference_forward(x2, params)
    assert logits2.shape == (300, act_dim)
    assert jnp.allclose(logits2, ref2, atol=2e-2, rtol=2e-2), "mismatch vs reference (batched)"

    print("KERNEL_OK")
</pallas_src>

<mosaic_0001>
module attributes {stable_mosaic.version = 11 : i64} {
  func.func @_mlp_kernel(%arg0: i32, %arg1: memref<16x128xbf16, #tpu.memory_space<vmem>>, %arg2: memref<640x256xbf16, #tpu.memory_space<vmem>>, %arg3: memref<256x128xbf16, #tpu.memory_space<vmem>>, %arg4: memref<1x896xf32, #tpu.memory_space<vmem>>, %arg5: memref<16x128xf32, #tpu.memory_space<vmem>>) attributes {dimension_semantics = [#tpu.dimension_semantics<parallel>], iteration_bounds = array<i64: 1>, scalar_prefetch = 0 : i64, scratch_operands = 0 : i64, tpu.core_type = #tpu.core_type<tc>, window_params = [{transform_indices = @transform_0, window_bounds = array<i64: 16, 128>}, {pipeline_mode = #tpu.pipeline_mode<synchronous>, transform_indices = @transform_1, window_bounds = array<i64: 640, 256>}, {pipeline_mode = #tpu.pipeline_mode<synchronous>, transform_indices = @transform_2, window_bounds = array<i64: 256, 128>}, {pipeline_mode = #tpu.pipeline_mode<synchronous>, transform_indices = @transform_3, window_bounds = array<i64: 1, 896>}, {transform_indices = @transform_4, window_bounds = array<i64: 16, 128>}]} {
    %c0 = arith.constant 0 : index
    %c0_0 = arith.constant 0 : index
    %0 = vector.load %arg2[%c0, %c0_0] : memref<640x256xbf16, #tpu.memory_space<vmem>>, vector<128x256xbf16>
    %c128 = arith.constant 128 : index
    %c0_1 = arith.constant 0 : index
    %1 = vector.load %arg2[%c128, %c0_1] : memref<640x256xbf16, #tpu.memory_space<vmem>>, vector<256x256xbf16>
    %c384 = arith.constant 384 : index
    %c0_2 = arith.constant 0 : index
    %2 = vector.load %arg2[%c384, %c0_2] : memref<640x256xbf16, #tpu.memory_space<vmem>>, vector<256x256xbf16>
    %c0_3 = arith.constant 0 : index
    %c0_4 = arith.constant 0 : index
    %3 = vector.load %arg4[%c0_3, %c0_4] : memref<1x896xf32, #tpu.memory_space<vmem>>, vector<1x256xf32>
    %c0_5 = arith.constant 0 : index
    %c256 = arith.constant 256 : index
    %4 = vector.load %arg4[%c0_5, %c256] : memref<1x896xf32, #tpu.memory_space<vmem>>, vector<1x256xf32>
    %c0_6 = arith.constant 0 : index
    %c512 = arith.constant 512 : index
    %5 = vector.load %arg4[%c0_6, %c512] : memref<1x896xf32, #tpu.memory_space<vmem>>, vector<1x256xf32>
    %c0_7 = arith.constant 0 : index
    %c768 = arith.constant 768 : index
    %6 = vector.load %arg4[%c0_7, %c768] : memref<1x896xf32, #tpu.memory_space<vmem>>, vector<1x128xf32>
    %c0_8 = arith.constant 0 : index
    %c0_9 = arith.constant 0 : index
    %7 = vector.load %arg1[%c0_8, %c0_9] : memref<16x128xbf16, #tpu.memory_space<vmem>>, vector<16x128xbf16>
    %cst = arith.constant dense<0.000000e+00> : vector<16x256xf32>
    %8 = tpu.matmul %7, %0, %cst {dimension_numbers = #tpu.dot_dimension_numbers<[1], [0], [0], [1], [0, 0, 1, 1], [], []>} : vector<16x128xbf16>, vector<128x256xbf16>, vector<16x256xf32> -> vector<16x256xf32>
    %9 = vector.broadcast %3 : vector<1x256xf32> to vector<16x256xf32>
    %10 = arith.addf %8, %9 : vector<16x256xf32>
    %cst_10 = arith.constant 0.000000e+00 : f32
    %11 = vector.broadcast %cst_10 : f32 to vector<16x256xf32>
    %12 = arith.maximumf %10, %11 : vector<16x256xf32>
    %13 = arith.truncf %12 : vector<16x256xf32> to vector<16x256xbf16>
    %cst_11 = arith.constant dense<0.000000e+00> : vector<16x256xf32>
    %14 = tpu.matmul %13, %1, %cst_11 {dimension_numbers = #tpu.dot_dimension_numbers<[1], [0], [0], [1], [0, 0, 1, 1], [], []>} : vector<16x256xbf16>, vector<256x256xbf16>, vector<16x256xf32> -> vector<16x256xf32>
    %15 = vector.broadcast %4 : vector<1x256xf32> to vector<16x256xf32>
    %16 = arith.addf %14, %15 : vector<16x256xf32>
    %cst_12 = arith.constant 0.000000e+00 : f32
    %17 = vector.broadcast %cst_12 : f32 to vector<16x256xf32>
    %18 = arith.maximumf %16, %17 : vector<16x256xf32>
    %19 = arith.truncf %18 : vector<16x256xf32> to vector<16x256xbf16>
    %cst_13 = arith.constant dense<0.000000e+00> : vector<16x256xf32>
    %20 = tpu.matmul %19, %2, %cst_13 {dimension_numbers = #tpu.dot_dimension_numbers<[1], [0], [0], [1], [0, 0, 1, 1], [], []>} : vector<16x256xbf16>, vector<256x256xbf16>, vector<16x256xf32> -> vector<16x256xf32>
    %21 = vector.broadcast %5 : vector<1x256xf32> to vector<16x256xf32>
    %22 = arith.addf %20, %21 : vector<16x256xf32>
    %cst_14 = arith.constant 0.000000e+00 : f32
    %23 = vector.broadcast %cst_14 : f32 to vector<16x256xf32>
    %24 = arith.maximumf %22, %23 : vector<16x256xf32>
    %25 = arith.truncf %24 : vector<16x256xf32> to vector<16x256xbf16>
    %c0_15 = arith.constant 0 : index
    %c0_16 = arith.constant 0 : index
    %26 = vector.load %arg3[%c0_15, %c0_16] : memref<256x128xbf16, #tpu.memory_space<vmem>>, vector<256x128xbf16>
    %cst_17 = arith.constant dense<0.000000e+00> : vector<16x128xf32>
    %27 = tpu.matmul %25, %26, %cst_17 {dimension_numbers = #tpu.dot_dimension_numbers<[1], [0], [0], [1], [0, 0, 1, 1], [], []>} : vector<16x256xbf16>, vector<256x128xbf16>, vector<16x128xf32> -> vector<16x128xf32>
    %28 = vector.broadcast %6 : vector<1x128xf32> to vector<16x128xf32>
    %29 = arith.addf %27, %28 : vector<16x128xf32>
    %c0_18 = arith.constant 0 : index
    %c0_19 = arith.constant 0 : index
    %30 = vector.load %arg5[%c0_18, %c0_19] : memref<16x128xf32, #tpu.memory_space<vmem>>, vector<16x128xf32>
    tpu.vector_store %arg5[%c0_18, %c0_19], %29 {strides = array<i32>} : memref<16x128xf32, #tpu.memory_space<vmem>>, vector<16x128xf32>,
    return
  }
  func.func @transform_0(%arg0: i32) -> (i32, i32) {
    %c0_i32 = arith.constant 0 : i32
    %c0_i32_0 = arith.constant 0 : i32
    return %arg0, %c0_i32 : i32, i32
  }
  func.func @transform_1(%arg0: i32) -> (i32, i32) {
    %c0_i32 = arith.constant 0 : i32
    %c0_i32_0 = arith.constant 0 : i32
    %c0_i32_1 = arith.constant 0 : i32
    return %c0_i32, %c0_i32_0 : i32, i32
  }
  func.func @transform_2(%arg0: i32) -> (i32, i32) {
    %c0_i32 = arith.constant 0 : i32
    %c0_i32_0 = arith.constant 0 : i32
    %c0_i32_1 = arith.constant 0 : i32
    return %c0_i32, %c0_i32_0 : i32, i32
  }
  func.func @transform_3(%arg0: i32) -> (i32, i32) {
    %c0_i32 = arith.constant 0 : i32
    %c0_i32_0 = arith.constant 0 : i32
    %c0_i32_1 = arith.constant 0 : i32
    return %c0_i32, %c0_i32_0 : i32, i32
  }
  func.func @transform_4(%arg0: i32) -> (i32, i32) {
    %c0_i32 = arith.constant 0 : i32
    %c0_i32_0 = arith.constant 0 : i32
    return %arg0, %c0_i32 : i32, i32
  }
}

</mosaic_0001>

<bundles_post_ra>
// kernel: _forward_impl.1
= control target key start
LH: loop header
LB: loop body
LE: loop exit
PB: predicated region body
PF: predicated region fallthrough
CT: control target
= control target key end

     0   :  { %9 = vsyncpa [#allocation3], 0  ;;  %s1483_s0 = inlined_call_operand.vmem [shape: bf16[16,128], index: 0, kind: input, shape index: {}]   ;;  %s1484_s1 = inlined_call_operand.hbm [shape: bf16[640,256], index: 1, kind: input, shape index: {}]   ;;  %s1485_s2 = inlined_call_operand.hbm [shape: bf16[256,128], index: 2, kind: input, shape index: {}]   ;;  %s1486_s3 = inlined_call_operand.vmem [shape: f32[1,896], index: 3, kind: input, shape index: {}]   ;;  %s1487_s4 = inlined_call_operand.vmem [shape: f32[16,128], index: 4, kind: output, shape index: {}]  }
   0x1   :  { %s17_s17 = sshll.u32 %s1484_s1, 4  ;;  %s18_s17 = int_to_ptr.hbm [resolvable:$true] %s17_s17 }
   0x2   :  { %10 = vsyncpa [#allocation5], 0  ;;  %s1425_s18 = smov [#allocation2]   ;;  %s30_s22 = sshll.u32 %s1485_s2, 4  ;;  %s31_s22 = int_to_ptr.hbm [resolvable:$true] %s30_s22 }
   0x3   :  { %s19_s19 = sshll.u32 %s1425_s18, 4  ;;  %s1426_s23 = smov 128   ;;  %s20_s19 = int_to_ptr.vmem [resolvable:$true] %s19_s19 }
   0x4   :  { %s1427_s24 = smov 8   ;;  %s1428_s25 = smov [#allocation4]  }
   0x5   :  { %25 = dma.hbm_to_vmem [thread:$0]  %s18_s17, 10240, %s20_s19, [#allocation3], %s1426_s23, %s1426_s23, %s1427_s24  }
   0x6   :  { %s32_s26 = sshll.u32 %s1428_s25, 4  ;;  %s1429_s27 = smov 64   ;;  %s33_s26 = int_to_ptr.vmem [resolvable:$true] %s32_s26 }
   0x7   :  { %s1430_s28 = smov 4  }
   0x8   :  { %38 = dma.hbm_to_vmem [thread:$0]  %s31_s22, 2048, %s33_s26, [#allocation5], %s1429_s27, %s1429_s27, %s1430_s28  }
   0x9   :  { %1421 = dma.done.wait [#allocation3], 10240  }
   0xa   :  { %1422 = vsyncadd [#allocation3], 4294957056 }
   0xb   :  { %1423 = dma.done.wait [#allocation5], 2048  }
   0xc   :  { %1424 = vsyncadd [#allocation5], 4294965248  ;;  %v943_v0 = vld [vmem:[#allocation2 + $0x70] sm:$0xf]  ;;  %v1284_v1 = vld [vmem:[#allocation2 + $0x74] sm:$0xf0] }
   0xd   :  { %v1283_v2 = vld [vmem:[#allocation2 + $0x74] sm:$0xf]  ;;  %v944_v3 = vor.u32 %v1284_v1, %v943_v0  ;;  %v945_v4 = vld [vmem:[#allocation2 + $0x78] sm:$0xf0]  ;;  %v935_v5 = vld [vmem:[#allocation2 + $0x60] sm:$0xf] }
   0xe   :  { %v1282_v6 = vld [vmem:[#allocation2 + $0x64] sm:$0xf0]  ;;  %v948_v7 = vor.u32 %v1283_v2, %v945_v4  ;;  %v1281_v8 = vld [vmem:[#allocation2 + $0x64] sm:$0xf]  ;;  %v937_v9 = vld [vmem:[#allocation2 + $0x68] sm:$0xf0] }
   0xf   :  { %226 = vmatpush.bf16.msra.mxu0 %v944_v3  ;;  %v936_v10 = vor.u32 %v1282_v6, %v935_v5  ;;  %v940_v11 = vor.u32 %v1281_v8, %v937_v9  ;;  %v927_v12 = vld [vmem:[#allocation2 + $0x50] sm:$0xf]  ;;  %v1280_v13 = vld [vmem:[#allocation2 + $0x54] sm:$0xf0]  ;;  %v1279_v14 = vld [vmem:[#allocation2 + $0x54] sm:$0xf] }
  0x10   :  { %240 = vmatpush.bf16.msra.mxu1 %v948_v7  ;;  %v929_v15 = vld [vmem:[#allocation2 + $0x58] sm:$0xf0]  ;;  %v928_v16 = vor.u32 %v1280_v13, %v927_v12  ;;  %v919_v18 = vld [vmem:[#allocation2 + $0x40] sm:$0xf]  ;;  %v1278_v19 = vld [vmem:[#allocation2 + $0x44] sm:$0xf0] }
  0x11   :  { %v932_v17 = vor.u32 %v1279_v14, %v929_v15  ;;  %v1277_v20 = vld [vmem:[#allocation2 + $0x44] sm:$0xf]  ;;  %v921_v21 = vld [vmem:[#allocation2 + $0x48] sm:$0xf0]  ;;  %v920_v22 = vor.u32 %v1278_v19, %v919_v18  ;;  %v1007_v23 = vld [vmem:[#allocation2 + $0xf0] sm:$0xf] }
  0x12   :  { %v1300_v24 = vld [vmem:[#allocation2 + $0xf4] sm:$0xf0]  ;;  %v1071_v25 = vld [vmem:[#allocation2 + $0x170] sm:$0xf]  ;;  %v924_v26 = vor.u32 %v1277_v20, %v921_v21  ;;  %v1275_v31 = vld [vmem:[#allocation2 + $0x34] sm:$0xf] }
  0x13   :  { %227 = vmatpush.bf16.msra.mxu0 %v936_v10  ;;  %v911_v27 = vld [vmem:[#allocation2 + $0x30] sm:$0xf]  ;;  %v1276_v28 = vld [vmem:[#allocation2 + $0x34] sm:$0xf0]  ;;  %v1008_v29 = vor.u32 %v1300_v24, %v1007_v23  ;;  %v913_v32 = vld [vmem:[#allocation2 + $0x38] sm:$0xf0] }
  0x14   :  { %241 = vmatpush.bf16.msra.mxu1 %v940_v11  ;;  %v1316_v30 = vld [vmem:[#allocation2 + $0x174] sm:$0xf0]  ;;  %v999_v34 = vld [vmem:[#allocation2 + $0xe0] sm:$0xf]  ;;  %v1298_v35 = vld [vmem:[#allocation2 + $0xe4] sm:$0xf0]  ;;  %v912_v38 = vor.u32 %v1276_v28, %v911_v27  ;;  %v916_v43 = vor.u32 %v1275_v31, %v913_v32 }
  0x15   :  { %v1072_v33 = vor.u32 %v1316_v30, %v1071_v25  ;;  %425 = vmatpush.bf16.msra.mxu2 %v1008_v29  ;;  %v1063_v36 = vld [vmem:[#allocation2 + $0x160] sm:$0xf]  ;;  %v1314_v37 = vld [vmem:[#allocation2 + $0x164] sm:$0xf0]  ;;  %v1000_v41 = vor.u32 %v1298_v35, %v999_v34  ;;  %v1273_v44 = vld [vmem:[#allocation2 + $0x24] sm:$0xf] }
  0x16   :  { %v903_v39 = vld [vmem:[#allocation2 + $0x20] sm:$0xf]  ;;  %v1274_v40 = vld [vmem:[#allocation2 + $0x24] sm:$0xf0]  ;;  %v1064_v42 = vor.u32 %v1314_v37, %v1063_v36  ;;  %v991_v45 = vld [vmem:[#allocation2 + $0xd0] sm:$0xf] }
  0x17   :  { %228 = vmatpush.bf16.msra.mxu0 %v928_v16  ;;  %439 = vmatpush.bf16.msra.mxu3 %v1072_v33  ;;  %v1296_v46 = vld [vmem:[#allocation2 + $0xd4] sm:$0xf0]  ;;  %v905_v47 = vld [vmem:[#allocation2 + $0x28] sm:$0xf0]  ;;  %v1055_v48 = vld [vmem:[#allocation2 + $0x150] sm:$0xf]  ;;  %v904_v51 = vor.u32 %v1274_v40, %v903_v39 }
  0x18   :  { %242 = vmatpush.bf16.msra.mxu1 %v932_v17  ;;  %v1312_v49 = vld [vmem:[#allocation2 + $0x154] sm:$0xf0]  ;;  %v992_v50 = vor.u32 %v1296_v46, %v991_v45  ;;  %v895_v52 = vld [vmem:[#allocation2 + $0x10] sm:$0xf]  ;;  %v983_v54 = vld [vmem:[#allocation2 + $0xc0] sm:$0xf]  ;;  %v908_v56 = vor.u32 %v1273_v44, %v905_v47 }
  0x19   :  { %426 = vmatpush.bf16.msra.mxu2 %v1000_v41  ;;  %v1056_v53 = vor.u32 %v1312_v49, %v1055_v48  ;;  %v1294_v55 = vld [vmem:[#allocation2 + $0xc4] sm:$0xf0]  ;;  %v1272_v57 = vld [vmem:[#allocation2 + $0x14] sm:$0xf0]  ;;  %v1047_v58 = vld [vmem:[#allocation2 + $0x140] sm:$0xf] }
  0x1a   :  { %v1310_v59 = vld [vmem:[#allocation2 + $0x144] sm:$0xf0]  ;;  %v1271_v60 = vld [vmem:[#allocation2 + $0x14] sm:$0xf]  ;;  %v897_v61 = vld [vmem:[#allocation2 + $0x18] sm:$0xf0]  ;;  %v984_v62 = vor.u32 %v1294_v55, %v983_v54  ;;  %v896_v63 = vor.u32 %v1272_v57, %v895_v52 }
  0x1b   :  { %229 = vmatpush.bf16.msra.mxu0 %v920_v22  ;;  %440 = vmatpush.bf16.msra.mxu3 %v1064_v42  ;;  %v1048_v0 = vor.u32 %v1310_v59, %v1047_v58  ;;  %v900_v1 = vor.u32 %v1271_v60, %v897_v61  ;;  %v887_v2 = vld [vmem:[#allocation2] sm:$0xf]  ;;  %v1270_v3 = vld [vmem:[#allocation2 + $0x4] sm:$0xf0]  ;;  %v1269_v4 = vld [vmem:[#allocation2 + $0x4] sm:$0xf] }
  0x1c   :  { %243 = vmatpush.bf16.msra.mxu1 %v924_v26  ;;  %v889_v5 = vld [vmem:[#allocation2 + $0x8] sm:$0xf0]  ;;  %v1299_v6 = vld [vmem:[#allocation2 + $0xf4] sm:$0xf]  ;;  %v1009_v7 = vld [vmem:[#allocation2 + $0xf8] sm:$0xf0]  ;;  %v888_v10 = vor.u32 %v1270_v3, %v887_v2 }
  0x1d   :  { %427 = vmatpush.bf16.msra.mxu2 %v992_v50  ;;  %v1315_v8 = vld [vmem:[#allocation2 + $0x174] sm:$0xf]  ;;  %v1073_v9 = vld [vmem:[#allocation2 + $0x178] sm:$0xf0]  ;;  %v892_v11 = vor.u32 %v1269_v4, %v889_v5  ;;  %v1012_v12 = vor.u32 %v1299_v6, %v1009_v7  ;;  %v1297_v14 = vld [vmem:[#allocation2 + $0xe4] sm:$0xf] }
  0x1e   :  { %v1076_v13 = vor.u32 %v1315_v8, %v1073_v9  ;;  %v1001_v15 = vld [vmem:[#allocation2 + $0xe8] sm:$0xf0]  ;;  %v1349_v16 = vld [vmem:[%s1483_s0] sm:$0xff]  ;;  %v1295_v21 = vld [vmem:[#allocation2 + $0xd4] sm:$0xf] }
  0x1f   :  { %230 = vmatpush.bf16.msra.mxu0 %v912_v38  ;;  %441 = vmatpush.bf16.msra.mxu3 %v1056_v53  ;;  %v1313_v17 = vld [vmem:[#allocation2 + $0x164] sm:$0xf]  ;;  %v1065_v18 = vld [vmem:[#allocation2 + $0x168] sm:$0xf0]  ;;  %v1004_v19 = vor.u32 %v1297_v14, %v1001_v15  ;;  %v993_v22 = vld [vmem:[#allocation2 + $0xd8] sm:$0xf0] }
  0x20   :  { %244 = vmatpush.bf16.msra.mxu1 %v916_v43  ;;  %v1068_v20 = vor.u32 %v1313_v17, %v1065_v18  ;;  %v1311_v23 = vld [vmem:[#allocation2 + $0x154] sm:$0xf]  ;;  %v1057_v24 = vld [vmem:[#allocation2 + $0x158] sm:$0xf0]  ;;  %v996_v25 = vor.u32 %v1295_v21, %v993_v22  ;;  %v1293_v27 = vld [vmem:[#allocation2 + $0xc4] sm:$0xf] }
  0x21   :  { %428 = vmatpush.bf16.msra.mxu2 %v984_v62  ;;  %v1060_v26 = vor.u32 %v1311_v23, %v1057_v24  ;;  %v985_v28 = vld [vmem:[#allocation2 + $0xc8] sm:$0xf0]  ;;  %v1309_v29 = vld [vmem:[#allocation2 + $0x144] sm:$0xf]  ;;  %v975_v33 = vld [vmem:[#allocation2 + $0xb0] sm:$0xf] }
  0x22   :  { %v1049_v30 = vld [vmem:[#allocation2 + $0x148] sm:$0xf0]  ;;  %v988_v31 = vor.u32 %v1293_v27, %v985_v28  ;;  %v1292_v34 = vld [vmem:[#allocation2 + $0xb4] sm:$0xf0]  ;;  %v1039_v35 = vld [vmem:[#allocation2 + $0x130] sm:$0xf] }
  0x23   :  { %231 = vmatpush.bf16.msra.mxu0 %v904_v51  ;;  %442 = vmatpush.bf16.msra.mxu3 %v1048_v0  ;;  %v1052_v32 = vor.u32 %v1309_v29, %v1049_v30  ;;  %v976_v36 = vor.u32 %v1292_v34, %v975_v33  ;;  %v1308_v37 = vld [vmem:[#allocation2 + $0x134] sm:$0xf0]  ;;  %v1291_v38 = vld [vmem:[#allocation2 + $0xb4] sm:$0xf]  ;;  %v977_v39 = vld [vmem:[#allocation2 + $0xb8] sm:$0xf0] }
  0x24   :  { %245 = vmatpush.bf16.msra.mxu1 %v908_v56  ;;  %v1040_v40 = vor.u32 %v1308_v37, %v1039_v35  ;;  %v980_v41 = vor.u32 %v1291_v38, %v977_v39  ;;  %v1307_v42 = vld [vmem:[#allocation2 + $0x134] sm:$0xf]  ;;  %v1041_v43 = vld [vmem:[#allocation2 + $0x138] sm:$0xf0]  ;;  %v967_v45 = vld [vmem:[#allocation2 + $0xa0] sm:$0xf] }
  0x25   :  { %429 = vmatpush.bf16.msra.mxu2 %v976_v36  ;;  %v1044_v44 = vor.u32 %v1307_v42, %v1041_v43  ;;  %v1290_v46 = vld [vmem:[#allocation2 + $0xa4] sm:$0xf0]  ;;  %v1031_v48 = vld [vmem:[#allocation2 + $0x120] sm:$0xf]  ;;  %v1289_v50 = vld [vmem:[#allocation2 + $0xa4] sm:$0xf] }
  0x26   :  { %v968_v47 = vor.u32 %v1290_v46, %v967_v45  ;;  %v1306_v49 = vld [vmem:[#allocation2 + $0x124] sm:$0xf0]  ;;  %v969_v52 = vld [vmem:[#allocation2 + $0xa8] sm:$0xf0]  ;;  %v1305_v53 = vld [vmem:[#allocation2 + $0x124] sm:$0xf] }
  0x27   :  { %232 = vmatpush.bf16.msra.mxu0 %v896_v63  ;;  %443 = vmatpush.bf16.msra.mxu3 %v1040_v40  ;;  %v1032_v51 = vor.u32 %v1306_v49, %v1031_v48  ;;  %v1033_v54 = vld [vmem:[#allocation2 + $0x128] sm:$0xf0]  ;;  %v972_v55 = vor.u32 %v1289_v50, %v969_v52  ;;  %v959_v57 = vld [vmem:[#allocation2 + $0x90] sm:$0xf]  ;;  %v1288_v58 = vld [vmem:[#allocation2 + $0x94] sm:$0xf0] }
  0x28   :  { %246 = vmatpush.bf16.msra.mxu1 %v900_v1  ;;  %v1036_v56 = vor.u32 %v1305_v53, %v1033_v54  ;;  %v1023_v59 = vld [vmem:[#allocation2 + $0x110] sm:$0xf]  ;;  %v960_v60 = vor.u32 %v1288_v58, %v959_v57  ;;  %v1304_v61 = vld [vmem:[#allocation2 + $0x114] sm:$0xf0]  ;;  %v1287_v62 = vld [vmem:[#allocation2 + $0x94] sm:$0xf] }
  0x29   :  { %430 = vmatpush.bf16.msra.mxu2 %v968_v47  ;;  %v961_v63 = vld [vmem:[#allocation2 + $0x98] sm:$0xf0]  ;;  %v1024_v0 = vor.u32 %v1304_v61, %v1023_v59  ;;  %v1303_v2 = vld [vmem:[#allocation2 + $0x114] sm:$0xf]  ;;  %v951_v5 = vld [vmem:[#allocation2 + $0x80] sm:$0xf] }
  0x2a   :  { %v964_v1 = vor.u32 %v1287_v62, %v961_v63  ;;  %v1025_v3 = vld [vmem:[#allocation2 + $0x118] sm:$0xf0]  ;;  %v1286_v6 = vld [vmem:[#allocation2 + $0x84] sm:$0xf0]  ;;  %v1015_v7 = vld [vmem:[#allocation2 + $0x100] sm:$0xf] }
  0x2b   :  { %233 = vmatpush.bf16.msra.mxu0 %v888_v10  ;;  %444 = vmatpush.bf16.msra.mxu3 %v1032_v51  ;;  %v1028_v4 = vor.u32 %v1303_v2, %v1025_v3  ;;  %v952_v8 = vor.u32 %v1286_v6, %v951_v5  ;;  %v1302_v9 = vld [vmem:[#allocation2 + $0x104] sm:$0xf0]  ;;  %v1285_v10 = vld [vmem:[#allocation2 + $0x84] sm:$0xf]  ;;  %v1017_v15 = vld [vmem:[#allocation2 + $0x108] sm:$0xf0] }
  0x2c   :  { %247 = vmatpush.bf16.msra.mxu1 %v892_v11  ;;  %v953_v11 = vld [vmem:[#allocation2 + $0x88] sm:$0xf0]  ;;  %v1301_v14 = vld [vmem:[#allocation2 + $0x104] sm:$0xf]  ;;  %v1199_v17 = vld [vmem:[#allocation2 + $0x270] sm:$0xf] }
  0x2d   :  { %431 = vmatpush.bf16.msra.mxu2 %v960_v60  ;;  %v1348_v18 = vld [vmem:[#allocation2 + $0x274] sm:$0xf0]  ;;  %v1201_v21 = vld [vmem:[#allocation2 + $0x278] sm:$0xf0]  ;;  %v1191_v22 = vld [vmem:[#allocation2 + $0x260] sm:$0xf] }
  0x2e   :  { %234 = vmatmul.bf16.vlgmr.msra.gmra.mxu0 %v1349_v16  ;;  %v1346_v23 = vld [vmem:[#allocation2 + $0x264] sm:$0xf0]  ;;  %v1135_v27 = vld [vmem:[#allocation2 + $0x1f0] sm:$0xf]  ;;  %v1332_v29 = vld [vmem:[#allocation2 + $0x1f4] sm:$0xf0] }
  0x2f   :  { %453 = vmatpush.bf16.msrb.mxu0 %v1012_v12  ;;  %248 = vmatmul.bf16.vlgmr.msra.gmra.mxu1 %v1349_v16  ;;  %v1016_v12 = vor.u32 %v1302_v9, %v1015_v7  ;;  %v1020_v16 = vor.u32 %v1301_v14, %v1017_v15  ;;  %v1192_v28 = vor.u32 %v1346_v23, %v1191_v22  ;;  %v1331_v30 = vld [vmem:[#allocation2 + $0x1f4] sm:$0xf]  ;;  %v1183_v35 = vld [vmem:[#allocation2 + $0x250] sm:$0xf]  ;;  %v1344_v36 = vld [vmem:[#allocation2 + $0x254] sm:$0xf0] }
  0x30   :  { %467 = vmatpush.bf16.msrb.mxu1 %v1076_v13  ;;  %445 = vmatpush.bf16.msra.mxu3 %v1024_v0  ;;  %v956_v13 = vor.u32 %v1285_v10, %v953_v11  ;;  %v1136_v33 = vor.u32 %v1332_v29, %v1135_v27  ;;  %v1343_v37 = vld [vmem:[#allocation2 + $0x254] sm:$0xf]  ;;  %v1185_v38 = vld [vmem:[#allocation2 + $0x258] sm:$0xf0]  ;;  %v1127_v39 = vld [vmem:[#allocation2 + $0x1e0] sm:$0xf] }
  0x31   :  { %432 = vmatpush.bf16.msra.mxu2 %v952_v8  ;;  %v1330_v40 = vld [vmem:[#allocation2 + $0x1e4] sm:$0xf0]  ;;  %v1329_v42 = vld [vmem:[#allocation2 + $0x1e4] sm:$0xf]  ;;  %v1129_v43 = vld [vmem:[#allocation2 + $0x1e8] sm:$0xf0]  ;;  %v1188_v46 = vor.u32 %v1343_v37, %v1185_v38 }
  0x32   :  { %v1132_v45 = vor.u32 %v1329_v42, %v1129_v43  ;;  %v1175_v47 = vld [vmem:[#allocation2 + $0x240] sm:$0xf]  ;;  %v1342_v48 = vld [vmem:[#allocation2 + $0x244] sm:$0xf0]  ;;  %v1341_v49 = vld [vmem:[#allocation2 + $0x244] sm:$0xf] }
  0x33   :  { %454 = vmatpush.bf16.msrb.mxu0 %v1004_v19  ;;  %v1347_v19 = vld [vmem:[#allocation2 + $0x274] sm:$0xf]  ;;  %v1177_v50 = vld [vmem:[#allocation2 + $0x248] sm:$0xf0]  ;;  %v1176_v51 = vor.u32 %v1342_v48, %v1175_v47  ;;  %v129_v53 = vld [vmem:[%s1486_s3] sm:$0x3] }
  0x34   :  { %468 = vmatpush.bf16.msrb.mxu1 %v1068_v20  ;;  %446 = vmatpush.bf16.msra.mxu3 %v1016_v12  ;;  %v1200_v20 = vor.u32 %v1348_v18, %v1199_v17  ;;  %v1204_v24 = vor.u32 %v1347_v19, %v1201_v21  ;;  %v1180_v52 = vor.u32 %v1341_v49, %v1177_v50  ;;  %v137_v57 = vperm.slane %v129_v53, 1  ;;  %v1119_v6 = vld [vmem:[#allocation2 + $0x1d0] sm:$0xf]  ;;  %v1328_v7 = vld [vmem:[#allocation2 + $0x1d4] sm:$0xf0] }
  0x35   :  { %652 = vmatpush.bf16.msrb.mxu2 %v1136_v33  ;;  %v1327_v8 = vld [vmem:[#allocation2 + $0x1d4] sm:$0xf]  ;;  %v1120_v9 = vor.u32 %v1328_v7, %v1119_v6  ;;  %v1121_v10 = vld [vmem:[#allocation2 + $0x1d8] sm:$0xf0]  ;;  %v1167_v12 = vld [vmem:[#allocation2 + $0x230] sm:$0xf] }
  0x36   :  { %v1124_v11 = vor.u32 %v1327_v8, %v1121_v10  ;;  %v1339_v14 = vld [vmem:[#allocation2 + $0x234] sm:$0xf]  ;;  %v1111_v18 = vld [vmem:[#allocation2 + $0x1c0] sm:$0xf]  ;;  %v1326_v19 = vld [vmem:[#allocation2 + $0x1c4] sm:$0xf0] }
  0x37   :  { %455 = vmatpush.bf16.msrb.mxu0 %v996_v25  ;;  %v1345_v25 = vld [vmem:[#allocation2 + $0x264] sm:$0xf]  ;;  %v1112_v21 = vor.u32 %v1326_v19, %v1111_v18  ;;  %v1113_v22 = vld [vmem:[#allocation2 + $0x1c8] sm:$0xf0]  ;;  %v1336_v37 = vld [vmem:[#allocation2 + $0x214] sm:$0xf0] }
  0x38   :  { %469 = vmatpush.bf16.msrb.mxu1 %v1060_v26  ;;  %v1193_v26 = vld [vmem:[#allocation2 + $0x268] sm:$0xf0]  ;;  %666 = vmatpush.bf16.msrb.mxu3 %v1200_v20  ;;  %v1325_v20 = vld [vmem:[#allocation2 + $0x1c4] sm:$0xf]  ;;  %v1335_v38 = vld [vmem:[#allocation2 + $0x214] sm:$0xf] }
  0x39   :  { %v1116_v23 = vor.u32 %v1325_v20, %v1113_v22  ;;  %v1095_v42 = vld [vmem:[#allocation2 + $0x1a0] sm:$0xf]  ;;  %v1322_v43 = vld [vmem:[#allocation2 + $0x1a4] sm:$0xf0]  ;;  %v1333_v50 = vld [vmem:[#allocation2 + $0x204] sm:$0xf] }
  0x3a   :  { %v1143_v48 = vld [vmem:[#allocation2 + $0x200] sm:$0xf]  ;;  %v1334_v49 = vld [vmem:[#allocation2 + $0x204] sm:$0xf0] }
  0x3b   :  { %456 = vmatpush.bf16.msrb.mxu0 %v988_v31  ;;  %v1137_v31 = vld [vmem:[#allocation2 + $0x1f8] sm:$0xf0] }
  0x3c   :  { %470 = vmatpush.bf16.msrb.mxu1 %v1052_v32  ;;  %v1196_v32 = vor.u32 %v1345_v25, %v1193_v26  ;;  %v1140_v34 = vor.u32 %v1331_v30, %v1137_v31  ;;  %667 = vmatpush.bf16.msrb.mxu3 %v1192_v28  ;;  %v1338_v25 = vld [vmem:[#allocation2 + $0x224] sm:$0xf0]  ;;  %v1337_v26 = vld [vmem:[#allocation2 + $0x224] sm:$0xf]  ;;  %v1161_v28 = vld [vmem:[#allocation2 + $0x228] sm:$0xf0] }
  0x3d   :  { %v1164_v29 = vor.u32 %v1337_v26, %v1161_v28  ;;  %v1103_v30 = vld [vmem:[#allocation2 + $0x1b0] sm:$0xf]  ;;  %v1324_v31 = vld [vmem:[#allocation2 + $0x1b4] sm:$0xf0] }
  0x3e   :  { %v1104_v33 = vor.u32 %v1324_v31, %v1103_v30  ;;  %v1363_v30 = vld [vmem:[#allocation4 + $0x68] sm:$0xff]  ;;  %v1356_v31 = vld [vmem:[#allocation4 + $0x30] sm:$0xff] }
  0x3f   :  { %457 = vmatpush.bf16.msrb.mxu0 %v980_v41  ;;  %v1128_v41 = vor.u32 %v1330_v40, %v1127_v39  ;;  %v1153_v40 = vld [vmem:[#allocation2 + $0x218] sm:$0xf0] }
  0x40   :  { %471 = vmatpush.bf16.msrb.mxu1 %v1044_v44  ;;  %v1184_v44 = vor.u32 %v1344_v36, %v1183_v35  ;;  %v1151_v36 = vld [vmem:[#allocation2 + $0x210] sm:$0xf] }
  0x41   :  { %653 = vmatpush.bf16.msrb.mxu2 %v1128_v41  ;;  %v1152_v39 = vor.u32 %v1336_v37, %v1151_v36  ;;  %v1156_v41 = vor.u32 %v1335_v38, %v1153_v40  ;;  %v1360_v36 = vld [vmem:[#allocation4 + $0x50] sm:$0xff]  ;;  %v1353_v37 = vld [vmem:[#allocation4 + $0x18] sm:$0xff]  ;;  %v1359_v38 = vld [vmem:[#allocation4 + $0x48] sm:$0xff] }
  0x42   :  { %668 = vmatpush.bf16.msrb.mxu3 %v1184_v44  ;;  %v1321_v44 = vld [vmem:[#allocation2 + $0x1a4] sm:$0xf] }
  0x43   :  { %458 = vmatpush.bf16.msrb.mxu0 %v972_v55  ;;  %v1358_v40 = vld [vmem:[#allocation4 + $0x40] sm:$0xff] }
  0x44   :  { %472 = vmatpush.bf16.msrb.mxu1 %v1036_v56  ;;  %v136_v56 = vperm.slane %v129_v53, 0 }
  0x45   :  { %654 = vmatpush.bf16.msrb.mxu2 %v1120_v9 }
  0x46   :  { %669 = vmatpush.bf16.msrb.mxu3 %v1176_v51  ;;  %v1144_v51 = vor.u32 %v1334_v49, %v1143_v48 }
  0x47   :  { %459 = vmatpush.bf16.msrb.mxu0 %v964_v1 }
  0x48   :  { %473 = vmatpush.bf16.msrb.mxu1 %v1028_v4 }
  0x49   :  { %655 = vmatpush.bf16.msrb.mxu2 %v1112_v21 }
  0x4b   :  { %460 = vmatpush.bf16.msrb.mxu0 %v956_v13  ;;  %v1340_v13 = vld [vmem:[#allocation2 + $0x234] sm:$0xf0] }
  0x4c   :  { %474 = vmatpush.bf16.msrb.mxu1 %v1020_v16  ;;  %v1168_v15 = vor.u32 %v1340_v13, %v1167_v12  ;;  %v1169_v16 = vld [vmem:[#allocation2 + $0x238] sm:$0xf0] }
  0x4d   :  { %v1172_v17 = vor.u32 %v1339_v14, %v1169_v16  ;;  %656 = vmatpush.bf16.msrb.mxu2 %v1104_v33  ;;  %v1355_v33 = vld [vmem:[#allocation4 + $0x28] sm:$0xff] }
  0x4e   :  { %670 = vmatpush.bf16.msrb.mxu3 %v1168_v15 }
  0x4f   :  { %680 = vmatpush.bf16.msra.mxu0 %v1140_v34  ;;  %v1105_v34 = vld [vmem:[#allocation2 + $0x1b8] sm:$0xf0] }
  0x50   :  { %694 = vmatpush.bf16.msra.mxu1 %v1204_v24  ;;  %v1159_v24 = vld [vmem:[#allocation2 + $0x220] sm:$0xf] }
  0x51   :  { %v1160_v27 = vor.u32 %v1338_v25, %v1159_v24 }
  0x53   :  { %681 = vmatpush.bf16.msra.mxu0 %v1132_v45  ;;  %671 = vmatpush.bf16.msrb.mxu3 %v1160_v27  ;;  %v1096_v45 = vor.u32 %v1322_v43, %v1095_v42  ;;  %v1350_v42 = vld [vmem:[#allocation4] sm:$0xff] }
  0x54   :  { %695 = vmatpush.bf16.msra.mxu1 %v1196_v32  ;;  %v1323_v32 = vld [vmem:[#allocation2 + $0x1b4] sm:$0xf]  ;;  %v131_v43 = vld [vmem:[%s1486_s3 + $0x4] sm:$0x3] }
  0x55   :  { %v1108_v35 = vor.u32 %v1323_v32, %v1105_v34  ;;  %657 = vmatpush.bf16.msrb.mxu2 %v1096_v45  ;;  %v1362_v32 = vld [vmem:[#allocation4 + $0x60] sm:$0xff]  ;;  %v1361_v34 = vld [vmem:[#allocation4 + $0x58] sm:$0xff] }
  0x57   :  { %682 = vmatpush.bf16.msra.mxu0 %v1124_v11  ;;  %672 = vmatpush.bf16.msrb.mxu3 %v1152_v39  ;;  %v1352_v39 = vld [vmem:[#allocation4 + $0x10] sm:$0xff] }
  0x58   :  { %696 = vmatpush.bf16.msra.mxu1 %v1188_v46  ;;  %v1097_v46 = vld [vmem:[#allocation2 + $0x1a8] sm:$0xf0] }
  0x59   :  { %v1100_v47 = vor.u32 %v1321_v44, %v1097_v46  ;;  %v489_v46 = vperm.slane %v131_v43, 1 }
  0x5b   :  { %683 = vmatpush.bf16.msra.mxu0 %v1116_v23  ;;  %673 = vmatpush.bf16.msrb.mxu3 %v1144_v51 }
  0x5c   :  { %697 = vmatpush.bf16.msra.mxu1 %v1180_v52  ;;  %v1145_v52 = vld [vmem:[#allocation2 + $0x208] sm:$0xf0] }
  0x5d   :  { %v1148_v53 = vor.u32 %v1333_v50, %v1145_v52  ;;  %v488_v50 = vperm.slane %v131_v43, 0 }
  0x5f   :  { %684 = vmatpush.bf16.msra.mxu0 %v1108_v35  ;;  %v1354_v35 = vld [vmem:[#allocation4 + $0x20] sm:$0xff] }
  0x60   :  { %698 = vmatpush.bf16.msra.mxu1 %v1172_v17 }
  0x63   :  { %685 = vmatpush.bf16.msra.mxu0 %v1100_v47 }
  0x64   :  { %699 = vmatpush.bf16.msra.mxu1 %v1164_v29 }
  0x68   :  { %700 = vmatpush.bf16.msra.mxu1 %v1156_v41  ;;  %v1351_v41 = vld [vmem:[#allocation4 + $0x8] sm:$0xff] }
  0x6c   :  { %701 = vmatpush.bf16.msra.mxu1 %v1148_v53 }
  0xab   :  { %v235_v54 = vpop.f32.mrf.mxu0 }
  0xac   :  { %v249_v55 = vpop.f32.mrf.mxu1  ;;  %v236_v58 = vadd.f32 %v235_v54, %v136_v56  ;;  %v1087_v54 = vld [vmem:[#allocation2 + $0x190] sm:$0xf] }
  0xad   :  { %v250_v59 = vadd.f32 %v249_v55, %v137_v57  ;;  %v1320_v55 = vld [vmem:[#allocation2 + $0x194] sm:$0xf0] }
  0xae   :  { %v254_v0 = vmax.f32 %v236_v58, 0.0  ;;  %v1089_v58 = vld [vmem:[#allocation2 + $0x198] sm:$0xf0] }
  0xaf   :  { %v255_v2 = vmax.f32 %v250_v59, 0.0 }
  0xb3   :  { %v237_v60 = vpop.f32.mrf.mxu0 }
  0xb4   :  { %v238_v61 = vadd.f32 %v237_v60, %v136_v56  ;;  %v251_v62 = vpop.f32.mrf.mxu1  ;;  %v1319_v56 = vld [vmem:[#allocation2 + $0x194] sm:$0xf]  ;;  %v1079_v60 = vld [vmem:[#allocation2 + $0x180] sm:$0xf] }
  0xb5   :  { %v252_v63 = vadd.f32 %v251_v62, %v137_v57  ;;  %v1088_v57 = vor.u32 %v1320_v55, %v1087_v54  ;;  %v1092_v59 = vor.u32 %v1319_v56, %v1089_v58  ;;  %v1317_v62 = vld [vmem:[#allocation2 + $0x184] sm:$0xf] }
  0xb6   :  { %v256_v1 = vmax.f32 %v238_v61, 0.0  ;;  %v1318_v61 = vld [vmem:[#allocation2 + $0x184] sm:$0xf0] }
  0xb7   :  { %v257_v3 = vmax.f32 %v252_v63, 0.0  ;;  %658 = vmatpush.bf16.msrb.mxu2 %v1088_v57  ;;  %686 = vmatpush.bf16.msra.mxu0 %v1092_v59  ;;  %v1080_v63 = vor.u32 %v1318_v61, %v1079_v60 }
  0xb8   :  { %v258_v4 = vpack.c.bf16 %v256_v1, %v254_v0  ;;  %v1081_v0 = vld [vmem:[#allocation2 + $0x188] sm:$0xf0] }
  0xb9   :  { %v259_v5 = vpack.c.bf16 %v257_v3, %v255_v2  ;;  %v1084_v1 = vor.u32 %v1317_v62, %v1081_v0  ;;  %v1365_v2 = vld [vmem:[#allocation4 + $0x78] sm:$0xff] }
  0xba   :  { %433 = vmatmul.bf16.vlgmr.msra.gmra.mxu2 %v258_v4  ;;  %461 = vmatmul.bf16.vlgmr.msrb.gmra.mxu0 %v258_v4  ;;  %v1357_v3 = vld [vmem:[#allocation4 + $0x38] sm:$0xff]  ;;  %v1364_v4 = vld [vmem:[#allocation4 + $0x70] sm:$0xff] }
  0xbb   :  { %447 = vmatmul.bf16.vlgmr.msra.gmra.mxu3 %v259_v5  ;;  %475 = vmatmul.bf16.vlgmr.msrb.gmra.mxu1 %v259_v5  ;;  %v130_v5 = vld [vmem:[%s1486_s3 + $0x2] sm:$0x3] }
  0xbc   :  { %659 = vmatpush.bf16.msrb.mxu2 %v1080_v63  ;;  %687 = vmatpush.bf16.msra.mxu0 %v1084_v1  ;;  %v262_v7 = vperm.slane %v130_v5, 1  ;;  %v261_v11 = vperm.slane %v130_v5, 0 }
  0xbd   :  { %859 = vmatpush.bf16.msra.mxu3 %v1365_v2 }
  0xc0   :  { %845 = vmatpush.bf16.msra.mxu2 %v1357_v3 }
  0xc1   :  { %860 = vmatpush.bf16.msra.mxu3 %v1364_v4  ;;  %v1372_v4 = vld [vmem:[%s1486_s3 + $0x6] ss:$0 sm:$0xff] }
  0xc4   :  { %846 = vmatpush.bf16.msra.mxu2 %v1356_v31 }
  0xc5   :  { %861 = vmatpush.bf16.msra.mxu3 %v1363_v30 }
  0xc8   :  { %847 = vmatpush.bf16.msra.mxu2 %v1355_v33 }
  0xc9   :  { %862 = vmatpush.bf16.msra.mxu3 %v1362_v32 }
  0xcc   :  { %848 = vmatpush.bf16.msra.mxu2 %v1354_v35 }
  0xcd   :  { %863 = vmatpush.bf16.msra.mxu3 %v1361_v34 }
  0xd0   :  { %849 = vmatpush.bf16.msra.mxu2 %v1353_v37 }
  0xd1   :  { %864 = vmatpush.bf16.msra.mxu3 %v1360_v36 }
  0xd4   :  { %850 = vmatpush.bf16.msra.mxu2 %v1352_v39 }
  0xd5   :  { %865 = vmatpush.bf16.msra.mxu3 %v1359_v38 }
  0xd8   :  { %851 = vmatpush.bf16.msra.mxu2 %v1351_v41 }
  0xd9   :  { %866 = vmatpush.bf16.msra.mxu3 %v1358_v40 }
  0xdc   :  { %852 = vmatpush.bf16.msra.mxu2 %v1350_v42 }
 0x137   :  { %v462_v6 = vpop.f32.mrf.mxu0 }
 0x138   :  { %v476_v8 = vpop.f32.mrf.mxu1  ;;  %v463_v9 = vadd.f32 %v462_v6, %v262_v7 }
 0x13a   :  { %v477_v14 = vadd.f32 %v476_v8, %v463_v9 }
 0x13c   :  { %v482_v19 = vmax.f32 %v477_v14, 0.0 }
 0x13d   :  { %v434_v10 = vpop.f32.mrf.mxu2 }
 0x13e   :  { %v448_v12 = vpop.f32.mrf.mxu3  ;;  %v435_v17 = vadd.f32 %v434_v10, %v261_v11 }
 0x13f   :  { %v464_v13 = vpop.f32.mrf.mxu0 }
 0x140   :  { %v465_v15 = vadd.f32 %v464_v13, %v262_v7  ;;  %v478_v16 = vpop.f32.mrf.mxu1  ;;  %v449_v22 = vadd.f32 %v448_v12, %v435_v17 }
 0x142   :  { %v479_v18 = vadd.f32 %v478_v16, %v465_v15  ;;  %v481_v27 = vmax.f32 %v449_v22, 0.0 }
 0x144   :  { %v484_v20 = vmax.f32 %v479_v18, 0.0 }
 0x145   :  { %v436_v21 = vpop.f32.mrf.mxu2 }
 0x146   :  { %v486_v23 = vpack.c.bf16 %v484_v20, %v482_v19  ;;  %v437_v24 = vadd.f32 %v436_v21, %v261_v11  ;;  %v450_v25 = vpop.f32.mrf.mxu3 }
 0x148   :  { %v451_v26 = vadd.f32 %v450_v25, %v437_v24  ;;  %674 = vmatmul.bf16.vlgmr.msrb.gmra.mxu3 %v486_v23  ;;  %702 = vmatmul.bf16.vlgmr.msra.gmra.mxu1 %v486_v23 }
 0x14a   :  { %v483_v28 = vmax.f32 %v451_v26, 0.0 }
 0x14c   :  { %v485_v29 = vpack.c.bf16 %v483_v28, %v481_v27 }
 0x14e   :  { %660 = vmatmul.bf16.vlgmr.msrb.gmra.mxu2 %v485_v29  ;;  %688 = vmatmul.bf16.vlgmr.msra.gmra.mxu0 %v485_v29 }
 0x1c5   :  { %v703_v44 = vpop.f32.mrf.mxu1 }
 0x1cb   :  { %v689_v45 = vpop.f32.mrf.mxu0  ;;  %v675_v48 = vpop.f32.mrf.mxu3 }
 0x1cc   :  { %v690_v47 = vadd.f32 %v689_v45, %v489_v46 }
 0x1cd   :  { %v705_v54 = vpop.f32.mrf.mxu1 }
 0x1ce   :  { %v704_v52 = vadd.f32 %v703_v44, %v690_v47 }
 0x1d0   :  { %v709_v57 = vmax.f32 %v704_v52, 0.0 }
 0x1d1   :  { %v661_v49 = vpop.f32.mrf.mxu2 }
 0x1d2   :  { %v662_v55 = vadd.f32 %v661_v49, %v488_v50 }
 0x1d3   :  { %v691_v51 = vpop.f32.mrf.mxu0  ;;  %v677_v63 = vpop.f32.mrf.mxu3 }
 0x1d4   :  { %v692_v53 = vadd.f32 %v691_v51, %v489_v46  ;;  %v676_v60 = vadd.f32 %v675_v48, %v662_v55 }
 0x1d6   :  { %v706_v56 = vadd.f32 %v705_v54, %v692_v53  ;;  %v708_v1 = vmax.f32 %v676_v60, 0.0 }
 0x1d8   :  { %v711_v58 = vmax.f32 %v706_v56, 0.0 }
 0x1d9   :  { %v663_v59 = vpop.f32.mrf.mxu2 }
 0x1da   :  { %v713_v61 = vpack.c.bf16 %v711_v58, %v709_v57  ;;  %v664_v62 = vadd.f32 %v663_v59, %v488_v50 }
 0x1dc   :  { %v678_v0 = vadd.f32 %v677_v63, %v664_v62  ;;  %867 = vmatmul.bf16.vlgmr.msra.gmra.mxu3 %v713_v61 }
 0x1de   :  { %v710_v2 = vmax.f32 %v678_v0, 0.0 }
 0x1e0   :  { %v712_v3 = vpack.c.bf16 %v710_v2, %v708_v1 }
 0x1e2   :  { %853 = vmatmul.bf16.vlgmr.msra.gmra.mxu2 %v712_v3 }
 0x25f   :  { %v868_v5 = vpop.f32.mrf.mxu3 }
 0x265   :  { %v854_v6 = vpop.f32.mrf.mxu2 }
 0x266   :  { %v855_v7 = vadd.f32 %v1372_v4, %v854_v6 }
 0x267   :  { %v870_v11 = vpop.f32.mrf.mxu3 }
 0x268   :  { %v869_v8 = vadd.f32 %v868_v5, %v855_v7 }
 0x26a   :  { %873 = vst [vmem:[%s1487_s4] sm:$0xff] %v869_v8 }
 0x26d   :  { %v856_v9 = vpop.f32.mrf.mxu2 }
 0x26e   :  { %v857_v10 = vadd.f32 %v1372_v4, %v856_v9 }
 0x270   :  { %v871_v12 = vadd.f32 %v870_v11, %v857_v10 }
 0x272   :  { %874 = vst [vmem:[%s1487_s4 + $0x8] sm:$0xff] %v871_v12 }
 0x273   :  { %879 = vsyncpa [#allocation3], 1 }
 0x274   :  { %880 = vsyncpa [#allocation5], 1 }

</bundles_post_ra>
